<compile_context>
chip_gen: v6e
topology: v6e:2x2x1
jax: 0.10.0
libtpu: 0.0.40
codegen_flags: <defaults>
</compile_context>

<pallas_src>
import jax
import jax.numpy as jnp
from jax.experimental import pallas as pl
from jax.experimental.pallas import tpu as pltpu

_LANE = 128
_MIB = 1 << 20


# ----------------------------------------------------------------------------- kernels
def _heatmap_kernel(x_ref, o_ref):
    """Full-channel block. x_ref: (BB, C, TR, LW); o_ref: (BB, TR, LW)."""
    x = x_ref[...].astype(jnp.float32)          # single upcast (v5e has no bf16 VPU/EUP)
    m = jnp.max(x, axis=1)                      # channel max on the VPU (C is non-minor)
    o_ref[...] = jax.nn.sigmoid(m).astype(o_ref.dtype)


def _heatmap_kernel_ctiled(x_ref, o_ref, acc_ref):
    """Channel-tiled path: grid axis 2 reduces over channel tiles (running max)."""
    c = pl.program_id(2)
    x = x_ref[...].astype(jnp.float32)
    m = jnp.max(x, axis=1)

    @pl.when(c == 0)
    def _():
        acc_ref[...] = m

    @pl.when(c != 0)
    def _():
        acc_ref[...] = jnp.maximum(acc_ref[...], m)

    @pl.when(c == pl.num_programs(2) - 1)
    def _():
        o_ref[...] = jax.nn.sigmoid(acc_ref[...]).astype(o_ref.dtype)


# ----------------------------------------------------------------------------- planning
def _sublane_pack(itemsize):
    return {4: 8, 2: 16, 1: 32}.get(itemsize, 8)


def _physical_vmem_bytes():
    try:
        info = pltpu.get_tpu_info()
        v = getattr(info, "vmem_capacity_bytes", None)
        if v:
            return int(v)
    except Exception:
        pass
    return 64 * _MIB  # conservative fallback (v7x per-TensorCore VMEM)


def _choose_lane_width(s_pad):
    for lw in (1024, 512, 256, 128):
        if s_pad % lw == 0:
            return lw
    return _LANE


def _largest_divisor_leq(n, cap):
    cap = max(1, min(n, cap))
    for d in range(cap, 0, -1):
        if n % d == 0:
            return d
    return 1


def _round_up(x, m):
    return ((x + m - 1) // m) * m


def _plan_tiling(B, C, R, LW, in_itemsize, out_itemsize):
    """Returns (bb, tc, tr, nb, nr, nc, ctiled, vmem_limit_bytes)."""
    phys = _physical_vmem_bytes()
    vmem_limit = max(min(phys * 3 // 4, 96 * _MIB), 32 * _MIB)
    vmem_limit = min(vmem_limit, phys)
    block_budget = int(vmem_limit * 0.75)        # double-buffered blocks + scratch
    target_step = 8 * _MIB                       # bytes moved per grid step
    min_split = 64 * 1024                        # don't create sub-64KiB steps for megacore

    spack = _sublane_pack(in_itemsize)
    tr_min = min(R, spack)

    def footprint(bb, tc, tr, ctiled):
        in_b = bb * tc * tr * LW * in_itemsize
        out_b = bb * tr * LW * out_itemsize
        scr = bb * tr * LW * 4 if ctiled else 0
        return 2 * (in_b + out_b) + scr

    def step_bytes(bb, tc, tr):
        return bb * tr * LW * (tc * in_itemsize + out_itemsize)

    # 1) batch folding: keep the whole batch in the block when one image's input is small.
    per_image_in = C * R * LW * in_itemsize
    bb = B if per_image_in <= target_step else 1
    if bb > 1 and footprint(bb, C, tr_min, False) > block_budget:
        bb = 1

    # 2) channel tiling only if a full-C block cannot fit even at the minimum row tile.
    tc = C
    ctiled = False
    if footprint(bb, C, tr_min, False) > block_budget:
        ctiled = True
        denom = max(1, 2 * bb * tr_min * LW * in_itemsize)
        avail = block_budget - 2 * bb * tr_min * LW * out_itemsize - bb * tr_min * LW * 4
        max_tc = max(1, avail // denom)
        tc = _largest_divisor_leq(C, max_tc)     # TC must divide C (reduction correctness)

    # 3) row tile: big enough to hit the per-step target, small enough to fit the budget.
    per_row_fp = 2 * bb * LW * (tc * in_itemsize + out_itemsize) + (bb * LW * 4 if ctiled else 0)
    tr_fit = max(spack, (block_budget // max(1, per_row_fp)) // spack * spack)
    per_row_step = bb * LW * (tc * in_itemsize + out_itemsize)
    tr_target = _round_up(max(1, -(-target_step // max(1, per_row_step))), spack)
    tr = min(tr_fit, tr_target)
    if tr >= R:
        tr = R                                   # full rows: always a legal block dim

    nb = B // bb
    nr = pl.cdiv(R, tr)
    nc = C // tc

    # 4) megacore (v7x has 2 TCs): avoid a single-point grid when splitting stays meaty.
    if nb * nr * nc == 1:
        if R >= 2 * spack and step_bytes(bb, tc, R) // 2 >= min_split:
            tr = _round_up(-(-R // 2), spack)
            nr = pl.cdiv(R, tr)
        elif bb == B and B > 1 and step_bytes(1, tc, tr) >= min_split:
            bb, nb = 1, B

    return bb, tc, tr, nb, nr, nc, ctiled, vmem_limit


# ----------------------------------------------------------------------------- wrapper
def heatmap_head_forward(predict):
    """Pallas implementation of HeatmapHead.forward(predict, targets=None).

    predict: (B, C, H, W) float array (NCHW, same layout as the PyTorch module).
    returns: (loss, heatmap) with loss == 0 and heatmap: (B, H, W) in predict's dtype.
    """
    B, C, H, W = predict.shape
    S = H * W
    in_dtype = predict.dtype
    out_dtype = in_dtype if jnp.issubdtype(in_dtype, jnp.floating) else jnp.float32
    in_itemsize = jnp.dtype(in_dtype).itemsize
    out_itemsize = jnp.dtype(out_dtype).itemsize

    # Lane-dense spatial layout: flatten (H, W) -> S, pad to a multiple of 128, fold into
    # (R, LW) with LW a multiple of 128 (unmasked, dense vector stores).
    s_pad = _round_up(S, _LANE)
    x = predict.reshape(B, C, S)
    if s_pad != S:
        x = jnp.pad(x, ((0, 0), (0, 0), (0, s_pad - S)))
    LW = _choose_lane_width(s_pad)
    R = s_pad // LW
    x = x.reshape(B, C, R, LW)

    bb, tc, tr, nb, nr, nc, ctiled, vmem_limit = _plan_tiling(
        B, C, R, LW, in_itemsize, out_itemsize)

    in_spec = pl.BlockSpec((bb, tc, tr, LW), lambda b, r, c: (b, c, r, 0))
    out_spec = pl.BlockSpec((bb, tr, LW), lambda b, r, c: (b, r, 0))

    kernel = _heatmap_kernel_ctiled if ctiled else _heatmap_kernel
    scratch = [pltpu.VMEM((bb, tr, LW), jnp.float32)] if ctiled else []

    cost = pl.CostEstimate(
        flops=int(B * C * s_pad),                 # channel-max compares
        transcendentals=int(B * s_pad),           # one sigmoid per output element
        bytes_accessed=int(B * C * s_pad * in_itemsize + B * s_pad * out_itemsize),
    )

    heatmap = pl.pallas_call(
        kernel,
        out_shape=jax.ShapeDtypeStruct((B, R, LW), out_dtype),
        grid=(nb, nr, nc),
        in_specs=[in_spec],
        out_specs=out_spec,
        scratch_shapes=scratch,
        compiler_params=pltpu.CompilerParams(
            dimension_semantics=("parallel", "parallel", "arbitrary"),
            vmem_limit_bytes=int(vmem_limit),
        ),
        cost_estimate=cost,
    )(x)

    heatmap = heatmap.reshape(B, s_pad)[:, :S].reshape(B, H, W)
    return 0, heatmap


# ----------------------------------------------------------------------------- reference
def _reference_forward(predict):
    # Pure-JAX reference mirroring the PyTorch code exactly (sigmoid then channel max).
    p = jnp.transpose(predict, (0, 2, 3, 1))  # NHWC
    conf = jax.nn.sigmoid(p.astype(jnp.float32))
    return jnp.max(conf, axis=-1)


if __name__ == "__main__":
    key = jax.random.PRNGKey(0)

    shapes = [
        (2, 4, 16, 16),   # demo shape (cls_num=4): batch folded, single lane-dense step
        (1, 3, 24, 20),   # S=480 not a multiple of 128: exercises wrapper padding + slice
        (2, 6, 64, 96),   # larger spatial: exercises the batch-grid / megacore split path
    ]

    ok = True
    for shp in shapes:
        key, sub = jax.random.split(key)
        predict = jax.random.normal(sub, shp, dtype=jnp.float32)
        loss, heatmap = heatmap_head_forward(predict)
        heatmap = jax.block_until_ready(heatmap)
        ref = _reference_forward(predict)
        ok &= (heatmap.shape == (shp[0], shp[2], shp[3]))
        ok &= bool(jnp.allclose(heatmap, ref, atol=1e-6, rtol=1e-6))
        ok &= (loss == 0)

    assert ok
    print("KERNEL_OK")
</pallas_src>

<mosaic_0001>
module attributes {stable_mosaic.version = 11 : i64} {
  func.func @_heatmap_kernel(%arg0: i32, %arg1: i32, %arg2: i32, %arg3: memref<2x4x1x256xf32, #tpu.memory_space<vmem>>, %arg4: memref<2x1x256xf32, #tpu.memory_space<vmem>>) attributes {dimension_semantics = [#tpu.dimension_semantics<parallel>, #tpu.dimension_semantics<parallel>, #tpu.dimension_semantics<arbitrary>], iteration_bounds = array<i64: 1, 1, 1>, scalar_prefetch = 0 : i64, scratch_operands = 0 : i64, tpu.core_type = #tpu.core_type<tc>, window_params = [{transform_indices = @transform_0, window_bounds = array<i64: 2, 4, 1, 256>}, {transform_indices = @transform_1, window_bounds = array<i64: 2, 1, 256>}]} {
    %c0 = arith.constant 0 : index
    %c0_0 = arith.constant 0 : index
    %c0_1 = arith.constant 0 : index
    %c0_2 = arith.constant 0 : index
    %0 = vector.load %arg3[%c0, %c0_0, %c0_1, %c0_2] : memref<2x4x1x256xf32, #tpu.memory_space<vmem>>, vector<2x4x1x256xf32>
    %cst = arith.constant dense<0xFF800000> : vector<2x1x256xf32>
    %1 = vector.multi_reduction <maximumf>, %0, %cst [1] : vector<2x4x1x256xf32> to vector<2x1x256xf32>
    %2 = arith.negf %1 : vector<2x1x256xf32>
    %3 = math.exp %2 : vector<2x1x256xf32>
    %cst_3 = arith.constant 1.000000e+00 : f32
    %4 = vector.broadcast %cst_3 : f32 to vector<2x1x256xf32>
    %5 = arith.addf %4, %3 : vector<2x1x256xf32>
    %6 = arith.divf %4, %5 : vector<2x1x256xf32>
    %c0_4 = arith.constant 0 : index
    %c0_5 = arith.constant 0 : index
    %c0_6 = arith.constant 0 : index
    %7 = vector.load %arg4[%c0_4, %c0_5, %c0_6] : memref<2x1x256xf32, #tpu.memory_space<vmem>>, vector<2x1x256xf32>
    tpu.vector_store %arg4[%c0_4, %c0_5, %c0_6], %6 {strides = array<i32>} : memref<2x1x256xf32, #tpu.memory_space<vmem>>, vector<2x1x256xf32>,
    return
  }
  func.func @transform_0(%arg0: i32, %arg1: i32, %arg2: i32) -> (i32, i32, i32, i32) {
    %c0_i32 = arith.constant 0 : i32
    %c0_i32_0 = arith.constant 0 : i32
    return %arg0, %arg2, %arg1, %c0_i32 : i32, i32, i32, i32
  }
  func.func @transform_1(%arg0: i32, %arg1: i32, %arg2: i32) -> (i32, i32, i32) {
    %c0_i32 = arith.constant 0 : i32
    %c0_i32_0 = arith.constant 0 : i32
    return %arg0, %arg1, %c0_i32 : i32, i32, i32
  }
}

</mosaic_0001>

<bundles_post_ra>
// kernel: tpu_custom_call.1
= control target key start
LH: loop header
LB: loop body
LE: loop exit
PB: predicated region body
PF: predicated region fallthrough
CT: control target
= control target key end

     0   :  { %6 = vsyncpa [#allocation3], 0  ;;  %s188_s0 = inlined_call_operand.hbm [shape: f32[2,4,1,256], index: 0, kind: input, shape index: {}]   ;;  %s189_s1 = inlined_call_operand.hbm [shape: f32[2,1,256], index: 1, kind: output, shape index: {}]  }
   0x1   :  { %7 = vsyncpa [#allocation4], 0  ;;  %s138_s6 = smov [#allocation2]  }
   0x2   :  { %s13_s7 = sshll.u32 %s138_s6, 4  ;;  %s14_s7 = int_to_ptr.vmem [resolvable:$true] %s13_s7 }
   0x3   :  { %s102_s8 = scalar_lea.vmem %s14_s7, 256  ;;  %p107_p1 = scmp.lt.s32.totalorder %s14_s7, %s14_s7 }
   0x4   :  { %p103_p0 = scmp.ne.s32.totalorder %s14_s7, %s102_s8  ;;  %p108_p2 = scmp.lt.s32.totalorder %s102_s8, %s102_s8 }
   0x6   :  { %p109_p3 = por %p108_p2, %p107_p1 }
   0x8   :  { %p110_p4 = pnand %p109_p3, %p103_p0 }
   0xa   :  { %113 = shalt.err (!%p110_p4)
}
   0xb   :  { %s139_s9 = smov 32   ;;  %s140_s10 = smov 2  }
   0xc   :  { %19 = dma.hbm_to_vmem [thread:$0]  %s188_s0, 256, %s14_s7, [#allocation3], %s139_s9, %s139_s9, %s140_s10  }
   0xd   :  { %134 = dma.done.wait [#allocation3], 256  }
   0xe   :  { %135 = vsyncadd [#allocation3], 4294967040  ;;  %v31_v0 = vlaneseq  ;;  %v23_v2 = vld [vmem:[#allocation2] sm:$0x3]  ;;  %v24_v3 = vld [vmem:[#allocation2 + $0x2] sm:$0x3] }
   0xf   :  { %v25_v4 = vld [vmem:[#allocation2 + $0x4] sm:$0x3]  ;;  %v26_v5 = vld [vmem:[#allocation2 + $0x6] sm:$0x3]  ;;  %v27_v11 = vld [vmem:[#allocation2 + $0x8] sm:$0x3] }
  0x10   :  { %vm158_vm0 = vcmp.lt.s32.totalorder %v31_v0, 256  ;;  %v28_v12 = vld [vmem:[#allocation2 + $0xa] sm:$0x3]  ;;  %v29_v14 = vld [vmem:[#allocation2 + $0xc] sm:$0x3]  ;;  %s141_s0 = smov [#allocation5]  }
  0x11   :  { %v35_v6 = vsel %vm158_vm0, %v23_v2, -inf  ;;  %v36_v7 = vsel %vm158_vm0, %v24_v3, -inf  ;;  %v37_v8 = vsel %vm158_vm0, %v25_v4, -inf  ;;  %v39_v10 = vsel %vm158_vm0, %v26_v5, -inf  ;;  %v30_v15 = vld [vmem:[#allocation2 + $0xe] sm:$0x3] }
  0x12   :  { %v38_v9 = vmax.f32 %v35_v6, %v37_v8  ;;  %v40_v13 = vmax.f32 %v36_v7, %v39_v10  ;;  %v42_v16 = vsel %vm158_vm0, %v27_v11, -inf  ;;  %v43_v17 = vsel %vm158_vm0, %v28_v12, -inf  ;;  %s68_s13 = sshll.u32 %s141_s0, 4  ;;  %s69_s13 = int_to_ptr.vmem [resolvable:$true] %s68_s13 }
  0x13   :  { %v44_v18 = vsel %vm158_vm0, %v29_v14, -inf  ;;  %v46_v19 = vsel %vm158_vm0, %v30_v15, -inf  ;;  %s114_s14 = scalar_lea.vmem %s69_s13, 64  ;;  %p119_p6 = scmp.lt.s32.totalorder %s69_s13, %s69_s13 }
  0x14   :  { %v41_v20 = vmax.f32 %v38_v9, %v40_v13  ;;  %v45_v21 = vmax.f32 %v42_v16, %v44_v18  ;;  %v47_v22 = vmax.f32 %v43_v17, %v46_v19  ;;  %p115_p5 = scmp.ne.s32.totalorder %s69_s13, %s114_s14  ;;  %p120_p7 = scmp.lt.s32.totalorder %s114_s14, %s114_s14 }
  0x16   :  { %v80_v23 = vmul.f32 -1.442695, %v41_v20  ;;  %v48_v24 = vmax.f32 %v45_v21, %v47_v22  ;;  %p121_p8 = por %p120_p7, %p119_p6 }
  0x18   :  { %86 = vpow2.f32 %v80_v23  ;;  %v81_v25 = vmul.f32 -1.442695, %v48_v24  ;;  %p122_p9 = pnand %p121_p8, %p115_p5 }
  0x1a   :  { %88 = vpow2.f32 %v81_v25 }
  0x25   :  { %v87_v26 = vpop.eup %86 }
  0x26   :  { %v55_v27 = vadd.f32 1.0, %v87_v26 }
  0x27   :  { %v89_v28 = vpop.eup %88 }
  0x28   :  { %90 = vrcp.f32 %v55_v27  ;;  %v56_v29 = vadd.f32 1.0, %v89_v28 }
  0x2a   :  { %92 = vrcp.f32 %v56_v29 }
  0x35   :  { %v91_v30 = vpop.eup %90 }
  0x36   :  { %61 = vst.msk [vmem:[#allocation5] sm:$0x3] %vm158_vm0, %v91_v30 }
  0x37   :  { %v93_v31 = vpop.eup %92 }
  0x38   :  { %62 = vst.msk [vmem:[#allocation5 + $0x2] sm:$0x3] %vm158_vm0, %v93_v31 }
  0x39   :  { %125 = shalt.err (!%p122_p9)
}
  0x3a   :  { %74 = dma.vmem_to_hbm [thread:$0]  %s69_s13, 64, %s189_s1, [#allocation4], %s139_s9, %s139_s9, %s140_s10  }
  0x3b   :  { %136 = dma.done.wait [#allocation4], 64  }
  0x3c   :  { %137 = vsyncadd [#allocation4], 4294967232 }
  0x3d   :  { %78 = vsyncpa [#allocation3], 1 }
  0x3e   :  { %79 = vsyncpa [#allocation4], 1 }

</bundles_post_ra>
